<compile_context>
chip_gen: v5e
topology: v5e:2x2
jax: 0.10.0
libtpu: 0.0.40
codegen_flags: <defaults>
</compile_context>

<pallas_src>
import functools

import jax
import jax.numpy as jnp
from jax.experimental import pallas as pl
from jax.experimental.pallas import tpu as pltpu


_LANE = 128      # TPU lane width (last dim)
_SUBLANE = 8     # TPU sublane width (second-to-last dim)


def _round_up(n, m):
    return ((n + m - 1) // m) * m


# ----------------------------------------------------------------------------
# Activations (match torch.nn.functional defaults)
# ----------------------------------------------------------------------------
_ACTIVATIONS = {
    "relu": lambda x: jnp.maximum(x, 0.0),
    "tanh": jnp.tanh,
    "leaky_relu": lambda x: jnp.where(x > 0, x, 0.01 * x),
    # clamp the expm1 argument so the (discarded) positive branch does no
    # useless / overflowing EUP work
    "elu": lambda x: jnp.where(x > 0, x, jnp.expm1(jnp.minimum(x, 0.0))),
    "sigmoid": jax.nn.sigmoid,
}


# ----------------------------------------------------------------------------
# One-time parameter preparation (transpose + pad + pack) — NOT per forward
# ----------------------------------------------------------------------------
def prepare_actor_params(params, param_dtype=jnp.bfloat16):
    """params: list of (W, b) in torch.nn.Linear layout: W (out, in), b (out,).

    param_dtype: storage / MXU-input dtype of the weight slab.  bf16 (default)
      halves weight HBM->VMEM traffic and VMEM residency and uses the fast MXU
      path; the kernel still accumulates and does all elementwise math in f32.
      Use jnp.float32 for exact parity with the f32 torch reference.

    Returns (w_packed, b_packed, info):
      w_packed : (sum_i pad128(in_i), max_i pad128(out_i)) param_dtype slab;
                 layer i's transposed weight at rows [row_i, row_i+pad128(in_i)),
                 cols [0, pad128(out_i)); zeros elsewhere.
      b_packed : (pad8(num_layers), max_out_pad) f32; layer i's bias in row i.
      info     : static metadata used by the kernel / wrapper.
    """
    dims_in = [int(w.shape[1]) for (w, _) in params]
    dims_out = [int(w.shape[0]) for (w, _) in params]
    in_pads = [_round_up(d, _LANE) for d in dims_in]
    out_pads = [_round_up(d, _LANE) for d in dims_out]
    max_out = max(out_pads)
    total_rows = sum(in_pads)
    num_layers = len(params)

    # Invariant: padded weight rows/cols are exactly zero (zero is exact in
    # bf16 too), so padded lanes never contribute to the next layer even when
    # the activation is not zero-preserving (e.g. sigmoid(0)=0.5).  Keep this
    # invariant if the packing/padding policy ever changes.
    w_packed = jnp.zeros((total_rows, max_out), param_dtype)
    b_packed = jnp.zeros((_round_up(num_layers, _SUBLANE), max_out), jnp.float32)

    meta = []
    row = 0
    for i, (w, b) in enumerate(params):
        w_t = jnp.asarray(w, jnp.float32).T.astype(param_dtype)   # (in, out)
        b_v = jnp.asarray(b, jnp.float32)
        w_packed = w_packed.at[row:row + dims_in[i], 0:dims_out[i]].set(w_t)
        b_packed = b_packed.at[i, 0:dims_out[i]].set(b_v)
        meta.append((row, in_pads[i], out_pads[i]))
        row += in_pads[i]

    info = dict(
        meta=tuple(meta),
        state_dim=dims_in[0],
        action_dim=dims_out[-1],
        state_pad=in_pads[0],
        out_pad_last=out_pads[-1],
        max_out_pad=max_out,
        raw_dims=(tuple(dims_in), tuple(dims_out)),
    )
    return w_packed, b_packed, info


# ----------------------------------------------------------------------------
# Kernel: whole MLP fused; weights/biases come in as resident VMEM slabs
# ----------------------------------------------------------------------------
def _actor_kernel(meta, state_dim, activation,
                  x_ref, w_ref, b_ref, out_ref, xpad_ref):
    num_layers = len(meta)
    _, state_pad, _ = meta[0]

    if state_dim == state_pad:
        x = x_ref[...]                                      # (TM, state_pad) f32
    else:
        # Zero-pad the feature (lane) dim in VMEM: cheap VPU work hidden under
        # the matmuls instead of a full HBM pad pass in the wrapper.
        xpad_ref[...] = jnp.zeros_like(xpad_ref)
        xpad_ref[:, 0:state_dim] = x_ref[...]
        x = xpad_ref[...]

    for i, (row_off, in_pad, out_pad) in enumerate(meta):
        w = w_ref[row_off:row_off + in_pad, 0:out_pad]      # static, aligned slice
        # MXU inputs in the slab dtype (bf16 by default); f32 accumulation.
        lhs = x if x.dtype == w.dtype else x.astype(w.dtype)
        y = jnp.dot(lhs, w, preferred_element_type=jnp.float32)
        # NOTE: bias stays a (1, out_pad) broadcast-add in f32; folding it onto
        # the MXU (ones column) or stride-0 broadcast loads buys only a few %
        # in this fixed-overhead-dominated kernel and adds layout fragility.
        y = y + b_ref[i:i + 1, 0:out_pad]
        # elementwise math stays f32 (v5e has no bf16 VPU/EUP paths)
        x = jnp.tanh(y) if i == num_layers - 1 else activation(y)

    out_ref[...] = x.astype(out_ref.dtype)


# ----------------------------------------------------------------------------
# Batch tiling: balanced tile, no over-padding, optional 2-way split for v7x
# ----------------------------------------------------------------------------
def _choose_batch_tiling(batch, tm_cap, min_steps):
    b_rounded = _round_up(batch, _SUBLANE)
    tm_cap = max(_SUBLANE, _round_up(min(int(tm_cap), b_rounded), _SUBLANE))
    n_steps = max(pl.cdiv(b_rounded, tm_cap), int(min_steps))
    n_steps = max(1, min(n_steps, b_rounded // _SUBLANE))   # tiles >= 8 rows
    tm_eff = _round_up(pl.cdiv(b_rounded, n_steps), _SUBLANE)
    grid = pl.cdiv(batch, tm_eff)                           # Pallas masks the edge
    return tm_eff, grid


# ----------------------------------------------------------------------------
# Wrapper
# ----------------------------------------------------------------------------
def actor_forward(s, w_packed, b_packed, info, activation_function="relu",
                  tm=512, min_batch_steps=1):
    """s: (batch, state_dim) f32.  Returns (batch, action_dim) f32.

    tm:              batch-tile cap (rows per grid step); 512-1024 amortizes the
                     ~0.35 us per-step overhead at training batch sizes.
    min_batch_steps: set to 2 on v7x so the 'parallel' batch axis has >=2 grid
                     steps and both TensorCores get work (no effect on v5e/v6e).
    """
    activation = _ACTIVATIONS[activation_function]
    meta = info["meta"]
    state_dim = info["state_dim"]
    state_pad = info["state_pad"]
    out_pad_last = info["out_pad_last"]
    max_out_pad = info["max_out_pad"]
    action_dim = info["action_dim"]

    batch, sdim = s.shape
    assert sdim == state_dim, (sdim, state_dim)
    s = s.astype(jnp.float32)

    tm_eff, steps = _choose_batch_tiling(batch, tm, min_batch_steps)
    grid = (steps,)

    # --- VMEM budget (slabs are single-buffered, resident) -------------------
    w_bytes = w_packed.size * jnp.dtype(w_packed.dtype).itemsize
    b_bytes = b_packed.size * 4
    act_bytes = (2 * tm_eff * state_dim * 4          # double-buffered input tile
                 + 2 * tm_eff * out_pad_last * 4     # double-buffered output tile
                 + tm_eff * state_pad * 4            # lane-pad scratch
                 + 4 * tm_eff * max_out_pad * 4)     # in-flight layer temporaries
    needed = w_bytes + b_bytes + act_bytes
    vmem_limit = None
    if needed > 12 * 1024 * 1024:   # above the conservative v5e scoped default
        vmem_limit = int(min(64 * 1024 * 1024, _round_up(2 * needed, 1 << 20)))
    # TODO(synk): if the packed weight slab ever exceeds ~25% of scoped VMEM
    # (very wide actors on v7x's 64 MiB), stream it over a layer/K grid axis
    # (pltpu.emit_pipeline) instead of keeping it resident.

    # advisory cost hint for XLA's scheduler
    din, dout = info["raw_dims"]
    flops = 2 * batch * sum(i * o for i, o in zip(din, dout))
    trans = batch * dout[-1]                       # final tanh
    if activation_function in ("tanh", "sigmoid", "elu"):
        trans += batch * sum(dout[:-1])
    bytes_accessed = s.size * 4 + batch * out_pad_last * 4 + w_bytes + b_bytes
    cost = pl.CostEstimate(flops=flops, transcendentals=trans,
                           bytes_accessed=bytes_accessed)

    kernel = functools.partial(_actor_kernel, meta, state_dim, activation)

    out_p = pl.pallas_call(
        kernel,
        out_shape=jax.ShapeDtypeStruct((batch, out_pad_last), jnp.float32),
        grid=grid,
        in_specs=[
            # activations: batch-tiled, UNPADDED (feature block == full array
            # dim is legal; ragged batch edge is masked by Pallas)
            pl.BlockSpec((tm_eff, state_dim), lambda i: (i, 0)),
            # packed weights / bias: whole-array VMEM operands -> resident for
            # the whole grid, single-buffered (no double-buffer VMEM waste)
            pl.BlockSpec(memory_space=pltpu.MemorySpace.VMEM),
            pl.BlockSpec(memory_space=pltpu.MemorySpace.VMEM),
        ],
        out_specs=pl.BlockSpec((tm_eff, out_pad_last), lambda i: (i, 0)),
        scratch_shapes=[pltpu.VMEM((tm_eff, state_pad), jnp.float32)],
        compiler_params=pltpu.CompilerParams(
            dimension_semantics=("parallel",),
            vmem_limit_bytes=vmem_limit),
        cost_estimate=cost,
    )(s, w_packed, b_packed)

    # TODO(synk): for acting-time batches (<=8) the call is fixed-overhead
    # bound; keeping the bf16 slab resident across calls (cross-call VMEM
    # futures) or fusing the actor into the TD3 step is the remaining lever.
    return out_p[:, :action_dim]


def make_actor_forward(info, activation_function="relu", tm=512,
                       min_batch_steps=1):
    """Returns a jitted (s, w_packed, b_packed) -> action callable."""
    def fwd(s, w_packed, b_packed):
        return actor_forward(s, w_packed, b_packed, info,
                             activation_function, tm, min_batch_steps)
    return jax.jit(fwd)


# ----------------------------------------------------------------------------
# Deterministic parameter init (mirrors torch.nn.Linear default init)
# ----------------------------------------------------------------------------
def init_actor_params(key, state_dim, action_dim, hidden_layers):
    dims = [state_dim] + list(hidden_layers) + [action_dim]
    params = []
    for i in range(len(dims) - 1):
        fan_in, fan_out = dims[i], dims[i + 1]
        key, kw, kb = jax.random.split(key, 3)
        bound = 1.0 / jnp.sqrt(jnp.float32(fan_in))
        w = jax.random.uniform(kw, (fan_out, fan_in), jnp.float32,
                               minval=-bound, maxval=bound)
        b = jax.random.uniform(kb, (fan_out,), jnp.float32,
                               minval=-bound, maxval=bound)
        params.append((w, b))
    return params


# ----------------------------------------------------------------------------
# Pure-JAX reference
# ----------------------------------------------------------------------------
def actor_forward_ref(s, params, activation_function="relu"):
    activation = _ACTIVATIONS[activation_function]
    x = s
    for i, (w, b) in enumerate(params):
        x = x @ w.T + b
        x = activation(x) if i < len(params) - 1 else jnp.tanh(x)
    return x


if __name__ == "__main__":
    key = jax.random.PRNGKey(0)
    key, k_s, k_s2 = jax.random.split(key, 3)

    # Small shapes consistent with the module (state -> hidden MLP -> action).
    batch = 2
    state_dim = 24
    hidden_layers = (64, 32)
    action_dim = 2
    activation_function = "relu"

    s = jax.random.normal(k_s, (batch, state_dim), jnp.float32)
    params = init_actor_params(key, state_dim, action_dim, hidden_layers)
    ref = actor_forward_ref(s, params, activation_function)

    # 1) f32-packed weights: bit-faithful path, tight tolerance
    w32, b32, info32 = prepare_actor_params(params, param_dtype=jnp.float32)
    fwd32 = make_actor_forward(info32, activation_function)
    out32 = jax.block_until_ready(fwd32(s, w32, b32))
    assert out32.shape == (batch, action_dim)
    assert jnp.allclose(out32, ref, atol=1e-5, rtol=1e-5), (out32, ref)

    # 2) bf16-packed weights (default fast path): f32 accumulate/elementwise,
    #    looser tolerance vs. the f32 reference
    wbf, bbf, infobf = prepare_actor_params(params)
    fwdbf = make_actor_forward(infobf, activation_function)
    outbf = jax.block_until_ready(fwdbf(s, wbf, bbf))
    assert outbf.shape == (batch, action_dim)
    assert jnp.allclose(outbf, ref, atol=5e-2, rtol=5e-2), (outbf, ref)

    # 3) larger batch exercising a multi-step 'parallel' grid + masked edge
    batch2 = 20
    s2 = jax.random.normal(k_s2, (batch2, state_dim), jnp.float32)
    ref2 = actor_forward_ref(s2, params, activation_function)
    fwd_multi = make_actor_forward(info32, activation_function, tm=8,
                                   min_batch_steps=2)
    out2 = jax.block_until_ready(fwd_multi(s2, w32, b32))
    assert out2.shape == (batch2, action_dim)
    assert jnp.allclose(out2, ref2, atol=1e-5, rtol=1e-5), (out2, ref2)

    print("KERNEL_OK")
</pallas_src>

<mosaic_0001>
module attributes {stable_mosaic.version = 11 : i64} {
  func.func @_actor_kernel(%arg0: i32, %arg1: memref<8x24xf32, #tpu.memory_space<vmem>>, %arg2: memref<384x128xf32, #tpu.memory_space<vmem>>, %arg3: memref<8x128xf32, #tpu.memory_space<vmem>>, %arg4: memref<8x128xf32, #tpu.memory_space<vmem>>, %arg5: memref<8x128xf32, #tpu.memory_space<vmem>>) attributes {dimension_semantics = [#tpu.dimension_semantics<parallel>], iteration_bounds = array<i64: 1>, scalar_prefetch = 0 : i64, scratch_operands = 1 : i64, tpu.core_type = #tpu.core_type<tc>, window_params = [{transform_indices = @transform_0, window_bounds = array<i64: 8, 24>}, {pipeline_mode = #tpu.pipeline_mode<synchronous>, transform_indices = @transform_1, window_bounds = array<i64: 384, 128>}, {pipeline_mode = #tpu.pipeline_mode<synchronous>, transform_indices = @transform_2, window_bounds = array<i64: 8, 128>}, {transform_indices = @transform_3, window_bounds = array<i64: 8, 128>}]} {
    %cst = arith.constant 0.000000e+00 : f32
    %0 = vector.broadcast %cst : f32 to vector<8x128xf32>
    %c0 = arith.constant 0 : index
    %c0_0 = arith.constant 0 : index
    %1 = vector.load %arg5[%c0, %c0_0] : memref<8x128xf32, #tpu.memory_space<vmem>>, vector<8x128xf32>
    tpu.vector_store %arg5[%c0, %c0_0], %0 {strides = array<i32>} : memref<8x128xf32, #tpu.memory_space<vmem>>, vector<8x128xf32>,
    %c0_1 = arith.constant 0 : index
    %c0_2 = arith.constant 0 : index
    %2 = vector.load %arg1[%c0_1, %c0_2] : memref<8x24xf32, #tpu.memory_space<vmem>>, vector<8x24xf32>
    %c0_3 = arith.constant 0 : index
    %c0_4 = arith.constant 0 : index
    %3 = vector.load %arg5[%c0_3, %c0_4] : memref<8x128xf32, #tpu.memory_space<vmem>>, vector<8x24xf32>
    tpu.vector_store %arg5[%c0_3, %c0_4], %2 {strides = array<i32>} : memref<8x128xf32, #tpu.memory_space<vmem>>, vector<8x24xf32>,
    %c0_5 = arith.constant 0 : index
    %c0_6 = arith.constant 0 : index
    %4 = vector.load %arg5[%c0_5, %c0_6] : memref<8x128xf32, #tpu.memory_space<vmem>>, vector<8x128xf32>
    %c0_7 = arith.constant 0 : index
    %c0_8 = arith.constant 0 : index
    %5 = vector.load %arg2[%c0_7, %c0_8] : memref<384x128xf32, #tpu.memory_space<vmem>>, vector<128x128xf32>
    %cst_9 = arith.constant dense<0.000000e+00> : vector<8x128xf32>
    %6 = tpu.matmul %4, %5, %cst_9 {dimension_numbers = #tpu.dot_dimension_numbers<[1], [0], [0], [1], [0, 0, 1, 1], [], []>} : vector<8x128xf32>, vector<128x128xf32>, vector<8x128xf32> -> vector<8x128xf32>
    %c0_10 = arith.constant 0 : index
    %c0_11 = arith.constant 0 : index
    %7 = vector.load %arg3[%c0_10, %c0_11] : memref<8x128xf32, #tpu.memory_space<vmem>>, vector<1x128xf32>
    %8 = vector.broadcast %7 : vector<1x128xf32> to vector<8x128xf32>
    %9 = arith.addf %6, %8 : vector<8x128xf32>
    %cst_12 = arith.constant 0.000000e+00 : f32
    %10 = vector.broadcast %cst_12 : f32 to vector<8x128xf32>
    %11 = arith.maximumf %9, %10 : vector<8x128xf32>
    %c128 = arith.constant 128 : index
    %c0_13 = arith.constant 0 : index
    %12 = vector.load %arg2[%c128, %c0_13] : memref<384x128xf32, #tpu.memory_space<vmem>>, vector<128x128xf32>
    %cst_14 = arith.constant dense<0.000000e+00> : vector<8x128xf32>
    %13 = tpu.matmul %11, %12, %cst_14 {dimension_numbers = #tpu.dot_dimension_numbers<[1], [0], [0], [1], [0, 0, 1, 1], [], []>} : vector<8x128xf32>, vector<128x128xf32>, vector<8x128xf32> -> vector<8x128xf32>
    %c1 = arith.constant 1 : index
    %c0_15 = arith.constant 0 : index
    %14 = vector.load %arg3[%c1, %c0_15] : memref<8x128xf32, #tpu.memory_space<vmem>>, vector<1x128xf32>
    %15 = vector.broadcast %14 : vector<1x128xf32> to vector<8x128xf32>
    %16 = arith.addf %13, %15 : vector<8x128xf32>
    %cst_16 = arith.constant 0.000000e+00 : f32
    %17 = vector.broadcast %cst_16 : f32 to vector<8x128xf32>
    %18 = arith.maximumf %16, %17 : vector<8x128xf32>
    %c256 = arith.constant 256 : index
    %c0_17 = arith.constant 0 : index
    %19 = vector.load %arg2[%c256, %c0_17] : memref<384x128xf32, #tpu.memory_space<vmem>>, vector<128x128xf32>
    %cst_18 = arith.constant dense<0.000000e+00> : vector<8x128xf32>
    %20 = tpu.matmul %18, %19, %cst_18 {dimension_numbers = #tpu.dot_dimension_numbers<[1], [0], [0], [1], [0, 0, 1, 1], [], []>} : vector<8x128xf32>, vector<128x128xf32>, vector<8x128xf32> -> vector<8x128xf32>
    %c2 = arith.constant 2 : index
    %c0_19 = arith.constant 0 : index
    %21 = vector.load %arg3[%c2, %c0_19] : memref<8x128xf32, #tpu.memory_space<vmem>>, vector<1x128xf32>
    %22 = vector.broadcast %21 : vector<1x128xf32> to vector<8x128xf32>
    %23 = arith.addf %20, %22 : vector<8x128xf32>
    %24 = math.tanh %23 : vector<8x128xf32>
    %c0_20 = arith.constant 0 : index
    %c0_21 = arith.constant 0 : index
    %25 = vector.load %arg4[%c0_20, %c0_21] : memref<8x128xf32, #tpu.memory_space<vmem>>, vector<8x128xf32>
    tpu.vector_store %arg4[%c0_20, %c0_21], %24 {strides = array<i32>} : memref<8x128xf32, #tpu.memory_space<vmem>>, vector<8x128xf32>,
    return
  }
  func.func @transform_0(%arg0: i32) -> (i32, i32) {
    %c0_i32 = arith.constant 0 : i32
    %c0_i32_0 = arith.constant 0 : i32
    return %arg0, %c0_i32 : i32, i32
  }
  func.func @transform_1(%arg0: i32) -> (i32, i32) {
    %c0_i32 = arith.constant 0 : i32
    %c0_i32_0 = arith.constant 0 : i32
    %c0_i32_1 = arith.constant 0 : i32
    return %c0_i32, %c0_i32_0 : i32, i32
  }
  func.func @transform_2(%arg0: i32) -> (i32, i32) {
    %c0_i32 = arith.constant 0 : i32
    %c0_i32_0 = arith.constant 0 : i32
    %c0_i32_1 = arith.constant 0 : i32
    return %c0_i32, %c0_i32_0 : i32, i32
  }
  func.func @transform_3(%arg0: i32) -> (i32, i32) {
    %c0_i32 = arith.constant 0 : i32
    %c0_i32_0 = arith.constant 0 : i32
    return %arg0, %c0_i32 : i32, i32
  }
}

</mosaic_0001>

<bundles_post_ra>
// kernel: fwd.1
= control target key start
LH: loop header
LB: loop body
LE: loop exit
PB: predicated region body
PF: predicated region fallthrough
CT: control target
= control target key end

     0   :  { %8 = vsyncpa [#allocation4], 0  ;;  %s366_s0 = inlined_call_operand.hbm [shape: f32[2,24], index: 0, kind: input, shape index: {}]   ;;  %s367_s1 = inlined_call_operand.hbm [shape: f32[384,128], index: 1, kind: input, shape index: {}]   ;;  %s368_s2 = inlined_call_operand.hbm [shape: f32[8,128], index: 2, kind: input, shape index: {}]   ;;  %s369_s3 = inlined_call_operand.hbm [shape: f32[2,128], index: 3, kind: output, shape index: {}]  }
   0x1   :  { %9 = vsyncpa [#allocation7], 0 }
   0x2   :  { %10 = vsyncpa [#allocation5], 0  ;;  %s28_s14 = sshll.u32 %s367_s1, 4  ;;  %s29_s14 = int_to_ptr.hbm [resolvable:$true] %s28_s14 }
   0x3   :  { %14 = vsyncadd [#allocation4], 96  ;;  %s319_s15 = smov [#allocation6]   ;;  %s15_s19 = sshll.u32 %s366_s0, 4  ;;  %s16_s19 = int_to_ptr.hbm [resolvable:$true] %s15_s19 }
   0x4   :  { %s30_s16 = sshll.u32 %s319_s15, 4  ;;  %s320_s20 = smov 128   ;;  %s31_s16 = int_to_ptr.vmem [resolvable:$true] %s30_s16 }
   0x5   :  { %s321_s21 = smov 8   ;;  %s322_s22 = smov [#allocation3]  }
   0x6   :  { %36 = dma.hbm_to_vmem [thread:$0]  %s29_s14, 6144, %s31_s16, [#allocation7], %s320_s20, %s320_s20, %s321_s21  }
   0x7   :  { %s17_s23 = sshll.u32 %s322_s22, 4  ;;  %s323_s24 = smov 32   ;;  %s18_s23 = int_to_ptr.vmem [resolvable:$true] %s17_s23 }
   0x8   :  { %s324_s25 = smov 2   ;;  %s42_s27 = sshll.u32 %s368_s2, 4  ;;  %s43_s27 = int_to_ptr.hbm [resolvable:$true] %s42_s27 }
   0x9   :  { %23 = dma.hbm_to_vmem [thread:$0]  %s16_s19, 32, %s18_s23, [#allocation4], %s323_s24, %s323_s24, %s324_s25  }
   0xa   :  { %s325_s28 = smov [#allocation8]  }
   0xb   :  { %s44_s0 = sshll.u32 %s325_s28, 4  ;;  %s45_s0 = int_to_ptr.vmem [resolvable:$true] %s44_s0 }
   0xc   :  { %47 = dma.hbm_to_vmem [thread:$0]  %s43_s27, 128, %s45_s0, [#allocation7]  }
   0xd   :  { %313 = dma.done.wait [#allocation4], 128  }
   0xe   :  { %314 = vsyncadd [#allocation4], 4294967168 }
   0xf   :  { %315 = dma.done.wait [#allocation7], 6272  }
  0x10   :  { %316 = vsyncadd [#allocation7], 4294961024  ;;  %v326_v0 = vmov 0.0   ;;  %v80_v1 = vld [vmem:[#allocation6 + $0x78] sm:$0xff]  ;;  %v79_v2 = vld [vmem:[#allocation6 + $0x70] sm:$0xff]  ;;  %vm62_vm0 = vcmask 195584  }
  0x11   :  { %60 = vst [vmem:[#allocation2] sm:$0xff] %v326_v0  ;;  %83 = vmatpush.msra.mxu0 %v80_v1  ;;  %v78_v3 = vld [vmem:[#allocation6 + $0x68] sm:$0xff]  ;;  %v77_v4 = vld [vmem:[#allocation6 + $0x60] sm:$0xff]  ;;  %v61_v5 = vld [vmem:[#allocation3] sm:$0xff] }
  0x12   :  { %v119_v6 = vld [vmem:[#allocation6 + $0xf8] sm:$0xff]  ;;  %63 = vst.msk [vmem:[#allocation2] sm:$0xff] %vm62_vm0, %v61_v5  ;;  %v118_v8 = vld [vmem:[#allocation6 + $0xf0] sm:$0xff]  ;;  %v117_v9 = vld [vmem:[#allocation6 + $0xe8] sm:$0xff] }
  0x13   :  { %84 = vmatpush.msra.mxu0 %v79_v2  ;;  %v76_v7 = vld [vmem:[#allocation6 + $0x58] sm:$0xff]  ;;  %122 = vmatpush.msra.mxu1 %v119_v6  ;;  %v75_v10 = vld [vmem:[#allocation6 + $0x50] sm:$0xff]  ;;  %v116_v11 = vld [vmem:[#allocation6 + $0xe0] sm:$0xff] }
  0x14   :  { %v74_v12 = vld [vmem:[#allocation6 + $0x48] sm:$0xff]  ;;  %v115_v13 = vld [vmem:[#allocation6 + $0xd8] sm:$0xff]  ;;  %v73_v14 = vld [vmem:[#allocation6 + $0x40] sm:$0xff] }
  0x15   :  { %85 = vmatpush.msra.mxu0 %v78_v3  ;;  %123 = vmatpush.msra.mxu1 %v118_v8  ;;  %v114_v15 = vld [vmem:[#allocation6 + $0xd0] sm:$0xff]  ;;  %v72_v16 = vld [vmem:[#allocation6 + $0x38] sm:$0xff]  ;;  %v113_v17 = vld [vmem:[#allocation6 + $0xc8] sm:$0xff] }
  0x16   :  { %v71_v18 = vld [vmem:[#allocation6 + $0x30] sm:$0xff]  ;;  %v112_v19 = vld [vmem:[#allocation6 + $0xc0] sm:$0xff]  ;;  %v70_v20 = vld [vmem:[#allocation6 + $0x28] sm:$0xff] }
  0x17   :  { %86 = vmatpush.msra.mxu0 %v77_v4  ;;  %124 = vmatpush.msra.mxu1 %v117_v9  ;;  %v111_v21 = vld [vmem:[#allocation6 + $0xb8] sm:$0xff]  ;;  %v69_v22 = vld [vmem:[#allocation6 + $0x20] sm:$0xff]  ;;  %v110_v23 = vld [vmem:[#allocation6 + $0xb0] sm:$0xff] }
  0x18   :  { %v68_v24 = vld [vmem:[#allocation6 + $0x18] sm:$0xff]  ;;  %v109_v25 = vld [vmem:[#allocation6 + $0xa8] sm:$0xff]  ;;  %v67_v26 = vld [vmem:[#allocation6 + $0x10] sm:$0xff] }
  0x19   :  { %87 = vmatpush.msra.mxu0 %v76_v7  ;;  %125 = vmatpush.msra.mxu1 %v116_v11  ;;  %v108_v27 = vld [vmem:[#allocation6 + $0xa0] sm:$0xff]  ;;  %v66_v28 = vld [vmem:[#allocation6 + $0x8] sm:$0xff]  ;;  %v107_v29 = vld [vmem:[#allocation6 + $0x98] sm:$0xff] }
  0x1a   :  { %v65_v30 = vld [vmem:[#allocation6] sm:$0xff]  ;;  %v64_v31 = vld [vmem:[#allocation2] sm:$0xff]  ;;  %v105_v33 = vld [vmem:[#allocation6 + $0x88] sm:$0xff] }
  0x1b   :  { %88 = vmatpush.msra.mxu0 %v75_v10  ;;  %126 = vmatpush.msra.mxu1 %v115_v13  ;;  %v106_v32 = vld [vmem:[#allocation6 + $0x90] sm:$0xff]  ;;  %v104_v34 = vld [vmem:[#allocation6 + $0x80] sm:$0xff]  ;;  %v158_v35 = vld [vmem:[#allocation6 + $0x178] sm:$0xff] }
  0x1c   :  { %v157_v36 = vld [vmem:[#allocation6 + $0x170] sm:$0xff]  ;;  %161 = vmatpush.msra.mxu2 %v158_v35  ;;  %v156_v37 = vld [vmem:[#allocation6 + $0x168] sm:$0xff]  ;;  %v155_v38 = vld [vmem:[#allocation6 + $0x160] sm:$0xff] }
  0x1d   :  { %89 = vmatpush.msra.mxu0 %v74_v12  ;;  %127 = vmatpush.msra.mxu1 %v114_v15  ;;  %v154_v39 = vld [vmem:[#allocation6 + $0x158] sm:$0xff]  ;;  %v153_v40 = vld [vmem:[#allocation6 + $0x150] sm:$0xff]  ;;  %v152_v41 = vld [vmem:[#allocation6 + $0x148] sm:$0xff] }
  0x1e   :  { %162 = vmatpush.msra.mxu2 %v157_v36  ;;  %v151_v42 = vld [vmem:[#allocation6 + $0x140] sm:$0xff]  ;;  %v150_v43 = vld [vmem:[#allocation6 + $0x138] sm:$0xff]  ;;  %v149_v44 = vld [vmem:[#allocation6 + $0x130] sm:$0xff] }
  0x1f   :  { %90 = vmatpush.msra.mxu0 %v73_v14  ;;  %128 = vmatpush.msra.mxu1 %v113_v17  ;;  %v148_v45 = vld [vmem:[#allocation6 + $0x128] sm:$0xff]  ;;  %v147_v46 = vld [vmem:[#allocation6 + $0x120] sm:$0xff]  ;;  %v146_v47 = vld [vmem:[#allocation6 + $0x118] sm:$0xff] }
  0x20   :  { %163 = vmatpush.msra.mxu2 %v156_v37  ;;  %v212_v48 = vld [vmem:[#allocation8] ss:$0 sm:$0xff]  ;;  %v145_v52 = vld [vmem:[#allocation6 + $0x110] sm:$0xff]  ;;  %v144_v53 = vld [vmem:[#allocation6 + $0x108] sm:$0xff] }
  0x21   :  { %91 = vmatpush.msra.mxu0 %v72_v16  ;;  %129 = vmatpush.msra.mxu1 %v112_v19  ;;  %v143_v54 = vld [vmem:[#allocation6 + $0x100] sm:$0xff] }
  0x22   :  { %164 = vmatpush.msra.mxu2 %v155_v38  ;;  %v213_v55 = vld [vmem:[#allocation8 + $0x1] ss:$0 sm:$0xff]  ;;  %v214_v59 = vld [vmem:[#allocation8 + $0x2] ss:$0 sm:$0xff] }
  0x23   :  { %92 = vmatpush.msra.mxu0 %v71_v18  ;;  %130 = vmatpush.msra.mxu1 %v111_v21 }
  0x24   :  { %165 = vmatpush.msra.mxu2 %v154_v39 }
  0x25   :  { %93 = vmatpush.msra.mxu0 %v70_v20  ;;  %131 = vmatpush.msra.mxu1 %v110_v23 }
  0x26   :  { %166 = vmatpush.msra.mxu2 %v153_v40 }
  0x27   :  { %94 = vmatpush.msra.mxu0 %v69_v22  ;;  %132 = vmatpush.msra.mxu1 %v109_v25 }
  0x28   :  { %167 = vmatpush.msra.mxu2 %v152_v41 }
  0x29   :  { %95 = vmatpush.msra.mxu0 %v68_v24  ;;  %133 = vmatpush.msra.mxu1 %v108_v27 }
  0x2a   :  { %168 = vmatpush.msra.mxu2 %v151_v42 }
  0x2b   :  { %96 = vmatpush.msra.mxu0 %v67_v26  ;;  %134 = vmatpush.msra.mxu1 %v107_v29 }
  0x2c   :  { %169 = vmatpush.msra.mxu2 %v150_v43 }
  0x2d   :  { %97 = vmatpush.msra.mxu0 %v66_v28  ;;  %135 = vmatpush.msra.mxu1 %v106_v32 }
  0x2e   :  { %170 = vmatpush.msra.mxu2 %v149_v44 }
  0x2f   :  { %98 = vmatpush.msra.mxu0 %v65_v30  ;;  %136 = vmatpush.msra.mxu1 %v105_v33 }
  0x30   :  { %99 = vmatmul.f32.vlgmr.msra.gmra.mxu0 %v64_v31  ;;  %171 = vmatpush.msra.mxu2 %v148_v45 }
  0x31   :  { %137 = vmatpush.msra.mxu1 %v104_v34 }
  0x32   :  { %172 = vmatpush.msra.mxu2 %v147_v46 }
  0x34   :  { %173 = vmatpush.msra.mxu2 %v146_v47 }
  0x36   :  { %174 = vmatpush.msra.mxu2 %v145_v52 }
  0x38   :  { %175 = vmatpush.msra.mxu2 %v144_v53 }
  0x3a   :  { %176 = vmatpush.msra.mxu2 %v143_v54 }
  0xad   :  { %v100_v49 = vpop.f32.mrf.mxu0 }
  0xae   :  { %v101_v50 = vadd.f32 %v212_v48, %v100_v49 }
  0xb0   :  { %v103_v51 = vmax.f32 %v101_v50, 0.0 }
  0xb2   :  { %138 = vmatmul.f32.vlgmr.msra.gmra.mxu1 %v103_v51 }
 0x12f   :  { %v139_v56 = vpop.f32.mrf.mxu1 }
 0x130   :  { %v140_v57 = vadd.f32 %v213_v55, %v139_v56 }
 0x132   :  { %v142_v58 = vmax.f32 %v140_v57, 0.0 }
 0x134   :  { %177 = vmatmul.f32.vlgmr.msra.gmra.mxu2 %v142_v58 }
 0x1b7   :  { %v178_v60 = vpop.f32.mrf.mxu2 }
 0x1b8   :  { %v179_v61 = vadd.f32 %v214_v59, %v178_v60 }
 0x1ba   :  { %215 = vtanh.f32 %v179_v61 }
 0x1c0   :  { %v216_v62 = vpop.eup %215 }
 0x1c1   :  { %182 = vst [vmem:[#allocation9] sm:$0xff] %v216_v62 }
 0x1c2   :  { %186 = vsyncadd [#allocation5], 96  ;;  %s189_s30 = sshll.u32 %s369_s3, 4  ;;  %s327_s4 = smov [#allocation9]   ;;  %s190_s30 = int_to_ptr.hbm [resolvable:$true] %s189_s30 }
 0x1c3   :  { %s187_s5 = sshll.u32 %s327_s4, 4  ;;  %s188_s5 = int_to_ptr.vmem [resolvable:$true] %s187_s5 }
 0x1c4   :  { %195 = dma.vmem_to_hbm [thread:$0]  %s188_s5, 32, %s190_s30, [#allocation5], %s323_s24, %s323_s24, %s324_s25  }
 0x1c5   :  { %317 = dma.done.wait [#allocation5], 128  }
 0x1c6   :  { %318 = vsyncadd [#allocation5], 4294967168 }
 0x1c7   :  { %200 = vsyncpa [#allocation4], 1 }
 0x1c8   :  { %201 = vsyncpa [#allocation7], 1 }
 0x1c9   :  { %202 = vsyncpa [#allocation5], 1 }

</bundles_post_ra>
